<compile_context>
chip_gen: v6e
topology: v6e:2x2x1
jax: 0.10.0
libtpu: 0.0.40
codegen_flags: <defaults>
</compile_context>

<pallas_src>
import functools

import jax
import jax.numpy as jnp
from jax.experimental import pallas as pl
from jax.experimental.pallas import tpu as pltpu


def _avg_pool_kernel(x_ref, o_ref, *, taps, inv_area):
    # x_ref: (taps, th, Wo, tnc)   o_ref: (th, Wo, tnc)
    def load(t):
        v = x_ref[t]                      # leading-dim index: no lane striding
        if v.dtype != jnp.float32:
            v = v.astype(jnp.float32)     # up-cast only for sub-32-bit inputs
        return v

    acc = load(0)
    for t in range(1, taps):
        acc = acc + load(t)               # pure VPU adds on full vregs
    o_ref[...] = (acc * inv_area).astype(o_ref.dtype)


def downsampling_layer(x, scale_factor=2, *, block_h=None, block_nc=None):
    """Equivalent of DownsamplingLayer.forward for NCHW input."""
    if scale_factor <= 1:
        return x
    s = int(scale_factor)
    n, c, h, w = x.shape
    ho, wo = h // s, w // s
    nc = n * c
    taps = s * s

    # Floor-crop (matches F.avg_pool2d padding=0), then rearrange so taps are a
    # leading axis and channels are on the lane axis:
    #   (N, C, Ho*s, Wo*s) -> (s*s, Ho, Wo, N*C)
    xc = x[:, :, : ho * s, : wo * s]
    xr = xc.reshape(n, c, ho, s, wo, s)
    xt = jnp.transpose(xr, (3, 5, 2, 4, 0, 1)).reshape(taps, ho, wo, nc)

    itemsize = jnp.dtype(x.dtype).itemsize

    # ---- lane-axis (N*C) tile: full extent, or a multiple of 128 -------------
    if block_nc is None:
        tnc = nc if nc <= 256 else 256
    else:
        tnc = min(int(block_nc), nc)
        if tnc != nc and tnc % 128 != 0:
            tnc = nc  # keep the (8,128) rule satisfied
    # ---- Ho tile: target a few MiB of input per grid step --------------------
    if block_h is None:
        target_bytes = 4 * 1024 * 1024
        per_h_bytes = taps * wo * tnc * itemsize
        th = max(1, min(ho, target_bytes // max(per_h_bytes, 1)))
    else:
        th = max(1, min(int(block_h), ho))

    grid = (pl.cdiv(ho, th), pl.cdiv(nc, tnc))

    in_block = taps * th * wo * tnc * itemsize
    out_block = th * wo * tnc * itemsize
    # double-buffered input + output, plus headroom; keep under physical VMEM
    vmem_limit = int(min(60 * 2 ** 20, max(4 * (in_block + out_block),
                                           32 * 2 ** 20)))

    out = pl.pallas_call(
        functools.partial(_avg_pool_kernel, taps=taps,
                          inv_area=1.0 / float(taps)),
        out_shape=jax.ShapeDtypeStruct((ho, wo, nc), x.dtype),
        grid_spec=pltpu.PrefetchScalarGridSpec(
            num_scalar_prefetch=0,
            grid=grid,
            in_specs=[pl.BlockSpec((taps, th, wo, tnc),
                                   lambda i, j: (0, i, 0, j))],
            out_specs=pl.BlockSpec((th, wo, tnc), lambda i, j: (i, 0, j)),
        ),
        compiler_params=pltpu.CompilerParams(
            dimension_semantics=("parallel", "parallel"),
            vmem_limit_bytes=vmem_limit,
        ),
    )(xt)

    # (Ho, Wo, N*C) -> (N, C, Ho, Wo)
    return jnp.transpose(out.reshape(ho, wo, n, c), (2, 3, 0, 1))


def _reference(x, s):
    if s <= 1:
        return x
    n, c, h, w = x.shape
    ho, wo = h // s, w // s
    xr = x[:, :, : ho * s, : wo * s].astype(jnp.float32)
    xr = xr.reshape(n, c, ho, s, wo, s)
    return xr.mean(axis=(3, 5)).astype(x.dtype)


if __name__ == "__main__":
    key = jax.random.PRNGKey(0)

    # Primary test: matches the module's DownsamplingLayer on a small NCHW map.
    x = jax.random.normal(key, (2, 4, 16, 16), dtype=jnp.float32)
    y = jax.block_until_ready(downsampling_layer(x, scale_factor=2))
    y_ref = _reference(x, 2)
    assert y.shape == (2, 4, 8, 8), y.shape
    assert jnp.allclose(y, y_ref, atol=1e-5, rtol=1e-5), "mismatch vs reference"

    # Multi-step grid with a ragged Ho tail (exercises cdiv + boundary blocks).
    x2 = jax.random.normal(jax.random.PRNGKey(1), (2, 4, 32, 32),
                           dtype=jnp.float32)
    y2 = jax.block_until_ready(downsampling_layer(x2, scale_factor=2,
                                                  block_h=3))
    y2_ref = _reference(x2, 2)
    assert y2.shape == (2, 4, 16, 16), y2.shape
    assert jnp.allclose(y2, y2_ref, atol=1e-5, rtol=1e-5), "ragged-grid mismatch"

    # bf16 path (f32 accumulation inside the kernel).
    x3 = jax.random.normal(jax.random.PRNGKey(2), (2, 4, 16, 16),
                           dtype=jnp.bfloat16)
    y3 = jax.block_until_ready(downsampling_layer(x3, scale_factor=2))
    y3_ref = _reference(x3, 2)
    assert jnp.allclose(y3.astype(jnp.float32), y3_ref.astype(jnp.float32),
                        atol=2e-2, rtol=2e-2), "bf16 mismatch"

    print("KERNEL_OK")
</pallas_src>

<mosaic_0001>
module attributes {stable_mosaic.version = 11 : i64} {
  func.func @_avg_pool_kernel(%arg0: i32, %arg1: i32, %arg2: memref<4x8x8x8xf32, #tpu.memory_space<vmem>>, %arg3: memref<8x8x8xf32, #tpu.memory_space<vmem>>) attributes {dimension_semantics = [#tpu.dimension_semantics<parallel>, #tpu.dimension_semantics<parallel>], iteration_bounds = array<i64: 1, 1>, scalar_prefetch = 0 : i64, scratch_operands = 0 : i64, tpu.core_type = #tpu.core_type<tc>, window_params = [{transform_indices = @transform_0, window_bounds = array<i64: 4, 8, 8, 8>}, {transform_indices = @transform_1, window_bounds = array<i64: 8, 8, 8>}]} {
    %c0 = arith.constant 0 : index
    %c0_0 = arith.constant 0 : index
    %c0_1 = arith.constant 0 : index
    %c0_2 = arith.constant 0 : index
    %0 = vector.load %arg2[%c0, %c0_0, %c0_1, %c0_2] : memref<4x8x8x8xf32, #tpu.memory_space<vmem>>, vector<1x8x8x8xf32>
    %1 = vector.shape_cast %0 : vector<1x8x8x8xf32> to vector<8x8x8xf32>
    %c1 = arith.constant 1 : index
    %c0_3 = arith.constant 0 : index
    %c0_4 = arith.constant 0 : index
    %c0_5 = arith.constant 0 : index
    %2 = vector.load %arg2[%c1, %c0_3, %c0_4, %c0_5] : memref<4x8x8x8xf32, #tpu.memory_space<vmem>>, vector<1x8x8x8xf32>
    %3 = vector.shape_cast %2 : vector<1x8x8x8xf32> to vector<8x8x8xf32>
    %4 = arith.addf %1, %3 : vector<8x8x8xf32>
    %c2 = arith.constant 2 : index
    %c0_6 = arith.constant 0 : index
    %c0_7 = arith.constant 0 : index
    %c0_8 = arith.constant 0 : index
    %5 = vector.load %arg2[%c2, %c0_6, %c0_7, %c0_8] : memref<4x8x8x8xf32, #tpu.memory_space<vmem>>, vector<1x8x8x8xf32>
    %6 = vector.shape_cast %5 : vector<1x8x8x8xf32> to vector<8x8x8xf32>
    %7 = arith.addf %4, %6 : vector<8x8x8xf32>
    %c3 = arith.constant 3 : index
    %c0_9 = arith.constant 0 : index
    %c0_10 = arith.constant 0 : index
    %c0_11 = arith.constant 0 : index
    %8 = vector.load %arg2[%c3, %c0_9, %c0_10, %c0_11] : memref<4x8x8x8xf32, #tpu.memory_space<vmem>>, vector<1x8x8x8xf32>
    %9 = vector.shape_cast %8 : vector<1x8x8x8xf32> to vector<8x8x8xf32>
    %10 = arith.addf %7, %9 : vector<8x8x8xf32>
    %cst = arith.constant 2.500000e-01 : f32
    %11 = vector.broadcast %cst : f32 to vector<8x8x8xf32>
    %12 = arith.mulf %10, %11 : vector<8x8x8xf32>
    %c0_12 = arith.constant 0 : index
    %c0_13 = arith.constant 0 : index
    %c0_14 = arith.constant 0 : index
    %13 = vector.load %arg3[%c0_12, %c0_13, %c0_14] : memref<8x8x8xf32, #tpu.memory_space<vmem>>, vector<8x8x8xf32>
    tpu.vector_store %arg3[%c0_12, %c0_13, %c0_14], %12 {strides = array<i32>} : memref<8x8x8xf32, #tpu.memory_space<vmem>>, vector<8x8x8xf32>,
    return
  }
  func.func @transform_0(%arg0: i32, %arg1: i32) -> (i32, i32, i32, i32) {
    %c0_i32 = arith.constant 0 : i32
    %c0_i32_0 = arith.constant 0 : i32
    %c0_i32_1 = arith.constant 0 : i32
    return %c0_i32, %arg0, %c0_i32_0, %arg1 : i32, i32, i32, i32
  }
  func.func @transform_1(%arg0: i32, %arg1: i32) -> (i32, i32, i32) {
    %c0_i32 = arith.constant 0 : i32
    %c0_i32_0 = arith.constant 0 : i32
    return %arg0, %c0_i32, %arg1 : i32, i32, i32
  }
}

</mosaic_0001>

<bundles_post_ra>
// kernel: tpu_custom_call.1
= control target key start
LH: loop header
LB: loop body
LE: loop exit
PB: predicated region body
PF: predicated region fallthrough
CT: control target
= control target key end

     0   :  { %6 = vsyncpa [#allocation3], 0  ;;  %s198_s0 = inlined_call_operand.hbm [shape: f32[4,8,8,8], index: 0, kind: input, shape index: {}]   ;;  %s199_s1 = inlined_call_operand.hbm [shape: f32[8,8,8], index: 1, kind: output, shape index: {}]  }
   0x1   :  { %7 = vsyncpa [#allocation4], 0  ;;  %s164_s6 = smov [#allocation2]  }
   0x2   :  { %s13_s7 = sshll.u32 %s164_s6, 4  ;;  %s14_s7 = int_to_ptr.vmem [resolvable:$true] %s13_s7 }
   0x3   :  { %s128_s8 = scalar_lea.vmem %s14_s7, 4096  ;;  %p133_p1 = scmp.lt.s32.totalorder %s14_s7, %s14_s7 }
   0x4   :  { %p129_p0 = scmp.ne.s32.totalorder %s14_s7, %s128_s8  ;;  %p134_p2 = scmp.lt.s32.totalorder %s128_s8, %s128_s8 }
   0x6   :  { %p135_p3 = por %p134_p2, %p133_p1 }
   0x8   :  { %p136_p4 = pnand %p135_p3, %p129_p0 }
   0xa   :  { %139 = shalt.err (!%p136_p4)
}
   0xb   :  { %s165_s9 = smov 128   ;;  %s166_s10 = smov 8  }
   0xc   :  { %19 = dma.hbm_to_vmem [thread:$0]  %s198_s0, 4096, %s14_s7, [#allocation3], %s165_s9, %s165_s9, %s166_s10  }
   0xd   :  { %160 = dma.done.wait [#allocation3], 4096  }
   0xe   :  { %161 = vsyncadd [#allocation3], 4294963200  ;;  %v23_v0 = vld [vmem:[#allocation2] sm:$0xff]  ;;  %v24_v4 = vld [vmem:[#allocation2 + $0x8] sm:$0xff]  ;;  %vm90_vm0 = vcmask 64512   ;;  %s167_s0 = smov [#allocation5]  }
   0xf   :  { %v32_v1 = vld [vmem:[#allocation2 + $0x40] sm:$0xff]  ;;  %v33_v5 = vld [vmem:[#allocation2 + $0x48] sm:$0xff]  ;;  %v25_v9 = vld [vmem:[#allocation2 + $0x10] sm:$0xff]  ;;  %s104_s13 = sshll.u32 %s167_s0, 4  ;;  %s105_s13 = int_to_ptr.vmem [resolvable:$true] %s104_s13 }
  0x10   :  { %v49_v2 = vld [vmem:[#allocation2 + $0x80] sm:$0xff]  ;;  %v40_v3 = vadd.f32 %v32_v1, %v23_v0  ;;  %v41_v7 = vadd.f32 %v33_v5, %v24_v4  ;;  %v50_v8 = vld [vmem:[#allocation2 + $0x88] sm:$0xff]  ;;  %v34_v12 = vld [vmem:[#allocation2 + $0x50] sm:$0xff]  ;;  %s140_s14 = scalar_lea.vmem %s105_s13, 1024  ;;  %p145_p6 = scmp.lt.s32.totalorder %s105_s13, %s105_s13 }
  0x11   :  { %v66_v6 = vld [vmem:[#allocation2 + $0xc0] sm:$0xff]  ;;  %v67_v11 = vld [vmem:[#allocation2 + $0xc8] sm:$0xff]  ;;  %v51_v13 = vld [vmem:[#allocation2 + $0x90] sm:$0xff]  ;;  %v42_v15 = vadd.f32 %v34_v12, %v25_v9  ;;  %p141_p5 = scmp.ne.s32.totalorder %s105_s13, %s140_s14  ;;  %p146_p7 = scmp.lt.s32.totalorder %s140_s14, %s140_s14 }
  0x12   :  { %v57_v10 = vadd.f32 %v49_v2, %v40_v3  ;;  %v58_v14 = vadd.f32 %v50_v8, %v41_v7  ;;  %v26_v16 = vld [vmem:[#allocation2 + $0x18] sm:$0xff]  ;;  %v68_v20 = vld [vmem:[#allocation2 + $0xd0] sm:$0xff]  ;;  %v27_v22 = vld [vmem:[#allocation2 + $0x20] sm:$0xff] }
  0x13   :  { %v35_v17 = vld [vmem:[#allocation2 + $0x58] sm:$0xff]  ;;  %v36_v23 = vld [vmem:[#allocation2 + $0x60] sm:$0xff]  ;;  %v59_v25 = vadd.f32 %v51_v13, %v42_v15  ;;  %v28_v29 = vld [vmem:[#allocation2 + $0x28] sm:$0xff]  ;;  %p147_p8 = por %p146_p7, %p145_p6 }
  0x14   :  { %v52_v18 = vld [vmem:[#allocation2 + $0x98] sm:$0xff]  ;;  %v74_v19 = vadd.f32 %v66_v6, %v57_v10  ;;  %v43_v21 = vadd.f32 %v35_v17, %v26_v16  ;;  %v75_v24 = vadd.f32 %v67_v11, %v58_v14  ;;  %v44_v27 = vadd.f32 %v36_v23, %v27_v22  ;;  %v53_v28 = vld [vmem:[#allocation2 + $0xa0] sm:$0xff]  ;;  %v37_v33 = vld [vmem:[#allocation2 + $0x68] sm:$0xff] }
  0x15   :  { %v69_v26 = vld [vmem:[#allocation2 + $0xd8] sm:$0xff]  ;;  %v70_v32 = vld [vmem:[#allocation2 + $0xe0] sm:$0xff]  ;;  %v54_v34 = vld [vmem:[#allocation2 + $0xa8] sm:$0xff]  ;;  %v76_v36 = vadd.f32 %v68_v20, %v59_v25  ;;  %v45_v38 = vadd.f32 %v37_v33, %v28_v29  ;;  %p148_p9 = pnand %p147_p8, %p141_p5 }
  0x16   :  { %v82_v30 = vmul.f32 0.25, %v74_v19  ;;  %v60_v31 = vadd.f32 %v52_v18, %v43_v21  ;;  %v83_v35 = vmul.f32 0.25, %v75_v24  ;;  %v61_v37 = vadd.f32 %v53_v28, %v44_v27  ;;  %v29_v39 = vld [vmem:[#allocation2 + $0x30] sm:$0xff]  ;;  %v71_v43 = vld [vmem:[#allocation2 + $0xe8] sm:$0xff]  ;;  %v30_v45 = vld [vmem:[#allocation2 + $0x38] sm:$0xff] }
  0x17   :  { %v38_v40 = vld [vmem:[#allocation2 + $0x70] sm:$0xff]  ;;  %v39_v46 = vld [vmem:[#allocation2 + $0x78] sm:$0xff]  ;;  %v84_v47 = vmul.f32 0.25, %v76_v36  ;;  %v62_v49 = vadd.f32 %v54_v34, %v45_v38 }
  0x18   :  { %v55_v41 = vld [vmem:[#allocation2 + $0xb0] sm:$0xff]  ;;  %91 = vst.msk [vmem:[#allocation5] sm:$0xff] %vm90_vm0, %v82_v30  ;;  %v77_v42 = vadd.f32 %v69_v26, %v60_v31  ;;  %v46_v44 = vadd.f32 %v38_v40, %v29_v39  ;;  %92 = vst.msk [vmem:[#allocation5 + $0x8] sm:$0xff] %vm90_vm0, %v83_v35  ;;  %v78_v48 = vadd.f32 %v70_v32, %v61_v37  ;;  %v56_v52 = vld [vmem:[#allocation2 + $0xb8] sm:$0xff] }
  0x19   :  { %v72_v50 = vld [vmem:[#allocation2 + $0xf0] sm:$0xff]  ;;  %v47_v51 = vadd.f32 %v39_v46, %v30_v45  ;;  %v73_v55 = vld [vmem:[#allocation2 + $0xf8] sm:$0xff]  ;;  %93 = vst.msk [vmem:[#allocation5 + $0x10] sm:$0xff] %vm90_vm0, %v84_v47  ;;  %v79_v57 = vadd.f32 %v71_v43, %v62_v49 }
  0x1a   :  { %v85_v53 = vmul.f32 0.25, %v77_v42  ;;  %v63_v54 = vadd.f32 %v55_v41, %v46_v44  ;;  %v86_v56 = vmul.f32 0.25, %v78_v48 }
  0x1b   :  { %v64_v58 = vadd.f32 %v56_v52, %v47_v51  ;;  %v87_v60 = vmul.f32 0.25, %v79_v57 }
  0x1c   :  { %94 = vst.msk [vmem:[#allocation5 + $0x18] sm:$0xff] %vm90_vm0, %v85_v53  ;;  %v80_v59 = vadd.f32 %v72_v50, %v63_v54  ;;  %95 = vst.msk [vmem:[#allocation5 + $0x20] sm:$0xff] %vm90_vm0, %v86_v56 }
  0x1d   :  { %v81_v61 = vadd.f32 %v73_v55, %v64_v58  ;;  %96 = vst.msk [vmem:[#allocation5 + $0x28] sm:$0xff] %vm90_vm0, %v87_v60 }
  0x1e   :  { %v88_v62 = vmul.f32 0.25, %v80_v59 }
  0x1f   :  { %v89_v63 = vmul.f32 0.25, %v81_v61 }
  0x20   :  { %97 = vst.msk [vmem:[#allocation5 + $0x30] sm:$0xff] %vm90_vm0, %v88_v62 }
  0x21   :  { %98 = vst.msk [vmem:[#allocation5 + $0x38] sm:$0xff] %vm90_vm0, %v89_v63 }
  0x22   :  { %151 = shalt.err (!%p148_p9)
}
  0x23   :  { %110 = dma.vmem_to_hbm [thread:$0]  %s105_s13, 1024, %s199_s1, [#allocation4], %s165_s9, %s165_s9, %s166_s10  }
  0x24   :  { %162 = dma.done.wait [#allocation4], 1024  }
  0x25   :  { %163 = vsyncadd [#allocation4], 4294966272 }
  0x26   :  { %114 = vsyncpa [#allocation3], 1 }
  0x27   :  { %115 = vsyncpa [#allocation4], 1 }

</bundles_post_ra>
